<compile_context>
chip_gen: v7x
topology: tpu7x:2x2x1
jax: 0.10.0
libtpu: 0.0.40
codegen_flags: <defaults>
</compile_context>

<pallas_src>
import jax
import jax.numpy as jnp
from jax.experimental import pallas as pl
from jax.experimental.pallas import tpu as pltpu

LANE = 128  # pad every feature/output width to the vreg lane width


def _round_up(x, m):
    return ((x + m - 1) // m) * m


def _pad2d(a, rows, cols):
    return jnp.pad(a, ((0, rows - a.shape[0]), (0, cols - a.shape[1])))


def node_model_kernel(
    # inputs (VMEM)
    xe_ref,                                    # (TILE_E, Fx+Fe)  [x[row] | edge_attr] tile
    col_ref,                                   # (1, 1, TILE_E)   int32 col tile
    x_ref,                                     # (TILE_N, Fx)     node-feature block
    inv_deg_ref,                               # (TILE_N, 1)      1/max(deg,1)
    nid_ref,                                   # (TILE_N, 1)      int32 node ids of this block
    w1_ref, b1_ref, w2_ref, b2_ref,            # node_mlp_1 (lane-padded)
    w3x_ref, w3m_ref, b3_ref, w4_ref, b4_ref,  # node_mlp_2 (lane-padded)
    # outputs
    out_ref,                                   # (TILE_N, LANE)
    # scratch
    sums_ref,                                  # (TILE_N, LANE) scatter accumulator
):
    k = pl.program_id(1)                       # edge-tile axis (innermost, reduction)
    dt = w1_ref.dtype                          # MXU compute dtype (f32 or bf16)

    @pl.when(k == 0)
    def _init():
        sums_ref[...] = jnp.zeros_like(sums_ref)

    # ---- node_mlp_1 on the edge tile (single fused layer-1 matmul)
    h = jnp.dot(xe_ref[...], w1_ref[...], preferred_element_type=jnp.float32) + b1_ref[...]
    h = jnp.maximum(h, 0.0).astype(dt)
    h = jnp.dot(h, w2_ref[...], preferred_element_type=jnp.float32) + b2_ref[...]

    # ---- tiled scatter-add over col.  Padded tail edges carry col == N_pad
    # (out-of-range sentinel) -> their one-hot column is all zeros.
    scat = (nid_ref[...] == col_ref[0]).astype(dt)          # (TILE_N, TILE_E)
    sums_ref[...] += jnp.dot(scat, h.astype(dt), preferred_element_type=jnp.float32)

    # ---- finalize on the last edge tile: mean + node_mlp_2
    @pl.when(k == pl.num_programs(1) - 1)
    def _finalize():
        mean = (sums_ref[...] * inv_deg_ref[...]).astype(dt)          # scatter_mean
        h2 = (jnp.dot(x_ref[...], w3x_ref[...], preferred_element_type=jnp.float32)
              + jnp.dot(mean, w3m_ref[...], preferred_element_type=jnp.float32)
              + b3_ref[...])
        h2 = jnp.maximum(h2, 0.0).astype(dt)
        out_ref[...] = (jnp.dot(h2, w4_ref[...], preferred_element_type=jnp.float32)
                        + b4_ref[...])


def _vmem_limit_bytes(tile_e, tile_n, dtype_bytes):
    """Rough upper bound on VMEM use (double-buffered tiles + weights + temps)."""
    lane = LANE
    xe_tile = tile_e * lane * dtype_bytes                    # concat tile (lane-padded)
    col_tile = 8 * _round_up(tile_e, lane) * 4               # int32 col tile (sublane-padded)
    node_blk = tile_n * lane * 4                             # x / inv_deg / nid / out / sums
    weights = 10 * lane * lane * 4
    temps = (tile_n * _round_up(tile_e, lane) * 4            # one-hot temporary
             + 4 * tile_e * lane * 4                         # h / intermediates
             + 2 * tile_n * lane * 4)
    est = 2 * (xe_tile + col_tile) + 2 * 5 * node_blk + 2 * weights + temps
    return int(min(est + (8 << 20), 96 << 20))


def node_model_forward(x, edge_index, edge_attr, params, *,
                       tile_e=1024, tile_n=1024, compute_dtype=jnp.float32):
    """x: (N, Fx) f32, edge_index: (2, E) int, edge_attr: (E, Fe) f32."""
    N, Fx = x.shape
    E, Fe = edge_attr.shape
    Fin = Fx + Fe
    H = params["w2"].shape[1]          # 2 * Fin
    S = params["w4"].shape[0]          # Fin
    P = LANE
    assert Fx <= P and Fin <= P and H <= P and S <= P, "feature widths must fit one lane tile"

    # Tile sizes: multiples of 8 (sublane), no larger than the padded extents.
    tile_e = max(8, _round_up(min(tile_e, E), 8))
    tile_n = max(8, _round_up(min(tile_n, N), 8))
    E_pad = _round_up(E, tile_e)
    N_pad = _round_up(N, tile_n)
    num_e_tiles = E_pad // tile_e
    num_n_tiles = N_pad // tile_n

    row = edge_index[0].astype(jnp.int32)
    col = edge_index[1].astype(jnp.int32)

    # Wrapper-side gather + concat: [x[row] | edge_attr]  (kills the in-kernel loop).
    xe = jnp.concatenate([x[row].astype(jnp.float32),
                          edge_attr.astype(jnp.float32)], axis=1)
    xe_pad = jnp.pad(xe, ((0, E_pad - E), (0, 0))).astype(compute_dtype)

    col_pad = jnp.pad(col, (0, E_pad - E), constant_values=N_pad)  # sentinel -> no scatter hit
    col_tiles = col_pad.reshape(num_e_tiles, 1, tile_e)

    # Per-node 1/degree and node ids, blocked over node tiles.
    deg = jnp.zeros((N,), jnp.float32).at[col].add(1.0)
    inv_deg = (1.0 / jnp.maximum(deg, 1.0)).reshape(N, 1)
    inv_deg = jnp.pad(inv_deg, ((0, N_pad - N), (0, 0)))
    node_ids = jnp.arange(N_pad, dtype=jnp.int32).reshape(N_pad, 1)
    x_pad = jnp.pad(x.astype(jnp.float32), ((0, N_pad - N), (0, 0))).astype(compute_dtype)

    # Zero-pad all Linear weights/biases to 128-lane-wide outputs (exact).
    w1 = _pad2d(jnp.concatenate([params["w1x"], params["w1e"]], axis=0), Fin, P).astype(compute_dtype)
    b1 = _pad2d(params["b1"], 1, P)
    w2 = _pad2d(params["w2"], P, P).astype(compute_dtype)
    b2 = _pad2d(params["b2"], 1, P)
    w3x = _pad2d(params["w3x"], Fx, P).astype(compute_dtype)
    w3m = _pad2d(params["w3m"], P, P).astype(compute_dtype)
    b3 = _pad2d(params["b3"], 1, P)
    w4 = _pad2d(params["w4"], P, P).astype(compute_dtype)
    b4 = _pad2d(params["b4"], 1, P)

    def weight_spec(shape):            # resident block (constant block index)
        return pl.BlockSpec(shape, lambda n, k: (0, 0))

    grid_spec = pltpu.PrefetchScalarGridSpec(
        num_scalar_prefetch=0,
        grid=(num_n_tiles, num_e_tiles),     # edge (reduction) axis innermost
        in_specs=[
            pl.BlockSpec((tile_e, Fin), lambda n, k: (k, 0)),       # [x[row]|edge_attr] tile
            pl.BlockSpec((1, 1, tile_e), lambda n, k: (k, 0, 0)),   # col tile
            pl.BlockSpec((tile_n, Fx), lambda n, k: (n, 0)),        # x node block
            pl.BlockSpec((tile_n, 1), lambda n, k: (n, 0)),         # inv_deg
            pl.BlockSpec((tile_n, 1), lambda n, k: (n, 0)),         # node ids
            weight_spec((Fin, P)), weight_spec((1, P)),             # mlp1 L1
            weight_spec((P, P)), weight_spec((1, P)),               # mlp1 L2
            weight_spec((Fx, P)), weight_spec((P, P)), weight_spec((1, P)),  # mlp2 L1
            weight_spec((P, P)), weight_spec((1, P)),               # mlp2 L2
        ],
        out_specs=pl.BlockSpec((tile_n, P), lambda n, k: (n, 0)),
        scratch_shapes=[
            pltpu.VMEM((tile_n, P), jnp.float32),   # scatter-sum accumulator (f32)
        ],
    )

    out_padded = pl.pallas_call(
        node_model_kernel,
        out_shape=jax.ShapeDtypeStruct((N_pad, P), jnp.float32),
        grid_spec=grid_spec,
        compiler_params=pltpu.CompilerParams(
            dimension_semantics=("parallel", "arbitrary"),
            vmem_limit_bytes=_vmem_limit_bytes(
                tile_e, tile_n, jnp.dtype(compute_dtype).itemsize),
        ),
    )(xe_pad, col_tiles, x_pad, inv_deg, node_ids,
      w1, b1, w2, b2, w3x, w3m, b3, w4, b4)

    return out_padded[:N, :Fx]


def make_params(key, num_node_features, num_edge_features):
    """Deterministic synthetic weights; (in, out) orientation, biases (1, out)."""
    Fx, Fe = num_node_features, num_edge_features
    S = Fx + Fe          # input_size
    H = 2 * S            # hidden of node_mlp_1
    ks = jax.random.split(key, 8)
    scale = 0.1
    return {
        # node_mlp_1: Linear(S -> H), ReLU, Linear(H -> H)
        "w1x": scale * jax.random.normal(ks[0], (Fx, H), jnp.float32),
        "w1e": scale * jax.random.normal(ks[1], (Fe, H), jnp.float32),
        "b1": scale * jax.random.normal(ks[2], (1, H), jnp.float32),
        "w2": scale * jax.random.normal(ks[3], (H, H), jnp.float32),
        "b2": scale * jax.random.normal(ks[4], (1, H), jnp.float32),
        # node_mlp_2: Linear(Fx + H -> S), ReLU, Linear(S -> Fx)
        "w3x": scale * jax.random.normal(ks[5], (Fx, S), jnp.float32),
        "w3m": scale * jax.random.normal(ks[6], (H, S), jnp.float32),
        "b3": scale * jax.random.normal(ks[7], (1, S), jnp.float32),
        "w4": scale * jax.random.normal(jax.random.fold_in(key, 99), (S, Fx), jnp.float32),
        "b4": scale * jax.random.normal(jax.random.fold_in(key, 100), (1, Fx), jnp.float32),
    }


def reference_forward(x, edge_index, edge_attr, p):
    """Pure-JAX reference mirroring the PyTorch forward."""
    N = x.shape[0]
    row, col = edge_index[0], edge_index[1]
    w1 = jnp.concatenate([p["w1x"], p["w1e"]], axis=0)
    w3 = jnp.concatenate([p["w3x"], p["w3m"]], axis=0)

    out = jnp.concatenate([x[row], edge_attr], axis=1)
    out = jnp.maximum(out @ w1 + p["b1"], 0.0)
    out = out @ p["w2"] + p["b2"]
    sums = jnp.zeros((N, out.shape[1]), jnp.float32).at[col].add(out)
    cnts = jnp.zeros((N,), jnp.float32).at[col].add(1.0)
    mean = sums / jnp.maximum(cnts, 1.0)[:, None]
    h2 = jnp.concatenate([x, mean], axis=1)
    h2 = jnp.maximum(h2 @ w3 + p["b3"], 0.0)
    return h2 @ p["w4"] + p["b4"]


if __name__ == "__main__":
    # Small shapes consistent with the module's forward; tiles chosen so the
    # 2-D (node-tile x edge-tile) grid and the accumulator path are exercised.
    num_node_features = 4
    num_edge_features = 4
    N = 24    # nodes  -> 3 node tiles of 8
    E = 64    # edges  -> 4 edge tiles of 16

    key = jax.random.PRNGKey(0)
    kx, ke, kr, kc, kp = jax.random.split(key, 5)

    x = jax.random.normal(kx, (N, num_node_features), jnp.float32)
    edge_attr = jax.random.normal(ke, (E, num_edge_features), jnp.float32)
    edge_index = jnp.stack(
        [jax.random.randint(kr, (E,), 0, N, jnp.int32),
         jax.random.randint(kc, (E,), 0, N, jnp.int32)], axis=0)  # (2, E)

    params = make_params(kp, num_node_features, num_edge_features)

    # TODO(synk): on v6e/v7x, pass compute_dtype=jnp.bfloat16 for ~2-4x MXU rate
    # (one-hots are exact in bf16; accumulation stays f32 via preferred_element_type).
    out = node_model_forward(x, edge_index, edge_attr, params, tile_e=16, tile_n=8)
    out = jax.block_until_ready(out)

    ref = reference_forward(x, edge_index, edge_attr, params)
    assert out.shape == (N, num_node_features)
    assert jnp.allclose(out, ref, atol=1e-4, rtol=1e-4), "mismatch vs reference"

    print("KERNEL_OK")
</pallas_src>

<mosaic_0001>
module attributes {stable_mosaic.version = 11 : i64} {
  func.func @node_model_kernel(%arg0: i32, %arg1: i32, %arg2: memref<16x8xf32, #tpu.memory_space<vmem>>, %arg3: memref<1x1x16xi32, #tpu.memory_space<vmem>>, %arg4: memref<8x4xf32, #tpu.memory_space<vmem>>, %arg5: memref<8x1xf32, #tpu.memory_space<vmem>>, %arg6: memref<8x1xi32, #tpu.memory_space<vmem>>, %arg7: memref<8x128xf32, #tpu.memory_space<vmem>>, %arg8: memref<1x128xf32, #tpu.memory_space<vmem>>, %arg9: memref<128x128xf32, #tpu.memory_space<vmem>>, %arg10: memref<1x128xf32, #tpu.memory_space<vmem>>, %arg11: memref<4x128xf32, #tpu.memory_space<vmem>>, %arg12: memref<128x128xf32, #tpu.memory_space<vmem>>, %arg13: memref<1x128xf32, #tpu.memory_space<vmem>>, %arg14: memref<128x128xf32, #tpu.memory_space<vmem>>, %arg15: memref<1x128xf32, #tpu.memory_space<vmem>>, %arg16: memref<8x128xf32, #tpu.memory_space<vmem>>, %arg17: memref<8x128xf32, #tpu.memory_space<vmem>>) attributes {dimension_semantics = [#tpu.dimension_semantics<parallel>, #tpu.dimension_semantics<arbitrary>], iteration_bounds = array<i64: 3, 4>, scalar_prefetch = 0 : i64, scratch_operands = 1 : i64, tpu.core_type = #tpu.core_type<tc>, window_params = [{transform_indices = @transform_0, window_bounds = array<i64: 16, 8>}, {transform_indices = @transform_1, window_bounds = array<i64: 1, 1, 16>}, {transform_indices = @transform_2, window_bounds = array<i64: 8, 4>}, {transform_indices = @transform_3, window_bounds = array<i64: 8, 1>}, {transform_indices = @transform_4, window_bounds = array<i64: 8, 1>}, {pipeline_mode = #tpu.pipeline_mode<synchronous>, transform_indices = @transform_5, window_bounds = array<i64: 8, 128>}, {pipeline_mode = #tpu.pipeline_mode<synchronous>, transform_indices = @transform_6, window_bounds = array<i64: 1, 128>}, {pipeline_mode = #tpu.pipeline_mode<synchronous>, transform_indices = @transform_7, window_bounds = array<i64: 128, 128>}, {pipeline_mode = #tpu.pipeline_mode<synchronous>, transform_indices = @transform_8, window_bounds = array<i64: 1, 128>}, {pipeline_mode = #tpu.pipeline_mode<synchronous>, transform_indices = @transform_9, window_bounds = array<i64: 4, 128>}, {pipeline_mode = #tpu.pipeline_mode<synchronous>, transform_indices = @transform_10, window_bounds = array<i64: 128, 128>}, {pipeline_mode = #tpu.pipeline_mode<synchronous>, transform_indices = @transform_11, window_bounds = array<i64: 1, 128>}, {pipeline_mode = #tpu.pipeline_mode<synchronous>, transform_indices = @transform_12, window_bounds = array<i64: 128, 128>}, {pipeline_mode = #tpu.pipeline_mode<synchronous>, transform_indices = @transform_13, window_bounds = array<i64: 1, 128>}, {transform_indices = @transform_14, window_bounds = array<i64: 8, 128>}]} {
    %c0_i32 = arith.constant 0 : i32
    %0 = arith.cmpi eq, %arg1, %c0_i32 : i32
    %1 = arith.extui %0 : i1 to i32
    %c0_i32_0 = arith.constant 0 : i32
    %2 = arith.cmpi ne, %1, %c0_i32_0 : i32
    scf.if %2 {
      %cst_23 = arith.constant 0.000000e+00 : f32
      %31 = vector.broadcast %cst_23 : f32 to vector<8x128xf32>
      %c0_24 = arith.constant 0 : index
      %c0_25 = arith.constant 0 : index
      %32 = vector.load %arg17[%c0_24, %c0_25] : memref<8x128xf32, #tpu.memory_space<vmem>>, vector<8x128xf32>
      tpu.vector_store %arg17[%c0_24, %c0_25], %31 {strides = array<i32>} : memref<8x128xf32, #tpu.memory_space<vmem>>, vector<8x128xf32>,
    } else {
    }
    %c0 = arith.constant 0 : index
    %c0_1 = arith.constant 0 : index
    %3 = vector.load %arg2[%c0, %c0_1] : memref<16x8xf32, #tpu.memory_space<vmem>>, vector<16x8xf32>
    %c0_2 = arith.constant 0 : index
    %c0_3 = arith.constant 0 : index
    %4 = vector.load %arg7[%c0_2, %c0_3] : memref<8x128xf32, #tpu.memory_space<vmem>>, vector<8x128xf32>
    %cst = arith.constant dense<0.000000e+00> : vector<16x128xf32>
    %5 = tpu.matmul %3, %4, %cst {dimension_numbers = #tpu.dot_dimension_numbers<[1], [0], [0], [1], [0, 0, 1, 1], [], []>} : vector<16x8xf32>, vector<8x128xf32>, vector<16x128xf32> -> vector<16x128xf32>
    %c0_4 = arith.constant 0 : index
    %c0_5 = arith.constant 0 : index
    %6 = vector.load %arg8[%c0_4, %c0_5] : memref<1x128xf32, #tpu.memory_space<vmem>>, vector<1x128xf32>
    %7 = vector.broadcast %6 : vector<1x128xf32> to vector<16x128xf32>
    %8 = arith.addf %5, %7 : vector<16x128xf32>
    %cst_6 = arith.constant 0.000000e+00 : f32
    %9 = vector.broadcast %cst_6 : f32 to vector<16x128xf32>
    %10 = arith.maximumf %8, %9 : vector<16x128xf32>
    %c0_7 = arith.constant 0 : index
    %c0_8 = arith.constant 0 : index
    %11 = vector.load %arg9[%c0_7, %c0_8] : memref<128x128xf32, #tpu.memory_space<vmem>>, vector<128x128xf32>
    %cst_9 = arith.constant dense<0.000000e+00> : vector<16x128xf32>
    %12 = tpu.matmul %10, %11, %cst_9 {dimension_numbers = #tpu.dot_dimension_numbers<[1], [0], [0], [1], [0, 0, 1, 1], [], []>} : vector<16x128xf32>, vector<128x128xf32>, vector<16x128xf32> -> vector<16x128xf32>
    %c0_10 = arith.constant 0 : index
    %c0_11 = arith.constant 0 : index
    %13 = vector.load %arg10[%c0_10, %c0_11] : memref<1x128xf32, #tpu.memory_space<vmem>>, vector<1x128xf32>
    %14 = vector.broadcast %13 : vector<1x128xf32> to vector<16x128xf32>
    %15 = arith.addf %12, %14 : vector<16x128xf32>
    %c0_12 = arith.constant 0 : index
    %c0_13 = arith.constant 0 : index
    %16 = vector.load %arg6[%c0_12, %c0_13] : memref<8x1xi32, #tpu.memory_space<vmem>>, vector<8x1xi32>
    %c0_14 = arith.constant 0 : index
    %c0_15 = arith.constant 0 : index
    %c0_16 = arith.constant 0 : index
    %17 = vector.load %arg3[%c0_14, %c0_15, %c0_16] : memref<1x1x16xi32, #tpu.memory_space<vmem>>, vector<1x1x16xi32>
    %18 = vector.shape_cast %17 : vector<1x1x16xi32> to vector<1x16xi32>
    %19 = vector.broadcast %16 : vector<8x1xi32> to vector<8x16xi32>
    %20 = vector.broadcast %18 : vector<1x16xi32> to vector<8x16xi32>
    %21 = arith.cmpi eq, %19, %20 : vector<8x16xi32>
    %22 = arith.extui %21 : vector<8x16xi1> to vector<8x16xi32>
    %23 = arith.sitofp %22 : vector<8x16xi32> to vector<8x16xf32>
    %c0_17 = arith.constant 0 : index
    %c0_18 = arith.constant 0 : index
    %24 = vector.load %arg17[%c0_17, %c0_18] : memref<8x128xf32, #tpu.memory_space<vmem>>, vector<8x128xf32>
    %cst_19 = arith.constant dense<0.000000e+00> : vector<8x128xf32>
    %25 = tpu.matmul %23, %15, %cst_19 {dimension_numbers = #tpu.dot_dimension_numbers<[1], [0], [0], [1], [0, 0, 1, 1], [], []>} : vector<8x16xf32>, vector<16x128xf32>, vector<8x128xf32> -> vector<8x128xf32>
    %26 = arith.addf %24, %25 : vector<8x128xf32>
    %c0_20 = arith.constant 0 : index
    %c0_21 = arith.constant 0 : index
    %27 = vector.load %arg17[%c0_20, %c0_21] : memref<8x128xf32, #tpu.memory_space<vmem>>, vector<8x128xf32>
    tpu.vector_store %arg17[%c0_20, %c0_21], %26 {strides = array<i32>} : memref<8x128xf32, #tpu.memory_space<vmem>>, vector<8x128xf32>,
    %c3_i32 = arith.constant 3 : i32
    %28 = arith.cmpi eq, %arg1, %c3_i32 : i32
    %29 = arith.extui %28 : i1 to i32
    %c0_i32_22 = arith.constant 0 : i32
    %30 = arith.cmpi ne, %29, %c0_i32_22 : i32
    scf.if %30 {
      %c0_23 = arith.constant 0 : index
      %c0_24 = arith.constant 0 : index
      %31 = vector.load %arg17[%c0_23, %c0_24] : memref<8x128xf32, #tpu.memory_space<vmem>>, vector<8x128xf32>
      %c0_25 = arith.constant 0 : index
      %c0_26 = arith.constant 0 : index
      %32 = vector.load %arg5[%c0_25, %c0_26] : memref<8x1xf32, #tpu.memory_space<vmem>>, vector<8x1xf32>
      %33 = vector.broadcast %32 : vector<8x1xf32> to vector<8x128xf32>
      %34 = arith.mulf %31, %33 : vector<8x128xf32>
      %c0_27 = arith.constant 0 : index
      %c0_28 = arith.constant 0 : index
      %35 = vector.load %arg4[%c0_27, %c0_28] : memref<8x4xf32, #tpu.memory_space<vmem>>, vector<8x4xf32>
      %c0_29 = arith.constant 0 : index
      %c0_30 = arith.constant 0 : index
      %36 = vector.load %arg11[%c0_29, %c0_30] : memref<4x128xf32, #tpu.memory_space<vmem>>, vector<4x128xf32>
      %cst_31 = arith.constant dense<0.000000e+00> : vector<8x128xf32>
      %37 = tpu.matmul %35, %36, %cst_31 {dimension_numbers = #tpu.dot_dimension_numbers<[1], [0], [0], [1], [0, 0, 1, 1], [], []>} : vector<8x4xf32>, vector<4x128xf32>, vector<8x128xf32> -> vector<8x128xf32>
      %c0_32 = arith.constant 0 : index
      %c0_33 = arith.constant 0 : index
      %38 = vector.load %arg12[%c0_32, %c0_33] : memref<128x128xf32, #tpu.memory_space<vmem>>, vector<128x128xf32>
      %cst_34 = arith.constant dense<0.000000e+00> : vector<8x128xf32>
      %39 = tpu.matmul %34, %38, %cst_34 {dimension_numbers = #tpu.dot_dimension_numbers<[1], [0], [0], [1], [0, 0, 1, 1], [], []>} : vector<8x128xf32>, vector<128x128xf32>, vector<8x128xf32> -> vector<8x128xf32>
      %40 = arith.addf %37, %39 : vector<8x128xf32>
      %c0_35 = arith.constant 0 : index
      %c0_36 = arith.constant 0 : index
      %41 = vector.load %arg13[%c0_35, %c0_36] : memref<1x128xf32, #tpu.memory_space<vmem>>, vector<1x128xf32>
      %42 = vector.broadcast %41 : vector<1x128xf32> to vector<8x128xf32>
      %43 = arith.addf %40, %42 : vector<8x128xf32>
      %cst_37 = arith.constant 0.000000e+00 : f32
      %44 = vector.broadcast %cst_37 : f32 to vector<8x128xf32>
      %45 = arith.maximumf %43, %44 : vector<8x128xf32>
      %c0_38 = arith.constant 0 : index
      %c0_39 = arith.constant 0 : index
      %46 = vector.load %arg14[%c0_38, %c0_39] : memref<128x128xf32, #tpu.memory_space<vmem>>, vector<128x128xf32>
      %cst_40 = arith.constant dense<0.000000e+00> : vector<8x128xf32>
      %47 = tpu.matmul %45, %46, %cst_40 {dimension_numbers = #tpu.dot_dimension_numbers<[1], [0], [0], [1], [0, 0, 1, 1], [], []>} : vector<8x128xf32>, vector<128x128xf32>, vector<8x128xf32> -> vector<8x128xf32>
      %c0_41 = arith.constant 0 : index
      %c0_42 = arith.constant 0 : index
      %48 = vector.load %arg15[%c0_41, %c0_42] : memref<1x128xf32, #tpu.memory_space<vmem>>, vector<1x128xf32>
      %49 = vector.broadcast %48 : vector<1x128xf32> to vector<8x128xf32>
      %50 = arith.addf %47, %49 : vector<8x128xf32>
      %c0_43 = arith.constant 0 : index
      %c0_44 = arith.constant 0 : index
      %51 = vector.load %arg16[%c0_43, %c0_44] : memref<8x128xf32, #tpu.memory_space<vmem>>, vector<8x128xf32>
      tpu.vector_store %arg16[%c0_43, %c0_44], %50 {strides = array<i32>} : memref<8x128xf32, #tpu.memory_space<vmem>>, vector<8x128xf32>,
    } else {
    }
    return
  }
  func.func @transform_0(%arg0: i32, %arg1: i32) -> (i32, i32) {
    %c0_i32 = arith.constant 0 : i32
    %c0_i32_0 = arith.constant 0 : i32
    return %arg1, %c0_i32 : i32, i32
  }
  func.func @transform_1(%arg0: i32, %arg1: i32) -> (i32, i32, i32) {
    %c0_i32 = arith.constant 0 : i32
    %c0_i32_0 = arith.constant 0 : i32
    %c0_i32_1 = arith.constant 0 : i32
    return %arg1, %c0_i32, %c0_i32_0 : i32, i32, i32
  }
  func.func @transform_2(%arg0: i32, %arg1: i32) -> (i32, i32) {
    %c0_i32 = arith.constant 0 : i32
    %c0_i32_0 = arith.constant 0 : i32
    return %arg0, %c0_i32 : i32, i32
  }
  func.func @transform_3(%arg0: i32, %arg1: i32) -> (i32, i32) {
    %c0_i32 = arith.constant 0 : i32
    %c0_i32_0 = arith.constant 0 : i32
    return %arg0, %c0_i32 : i32, i32
  }
  func.func @transform_4(%arg0: i32, %arg1: i32) -> (i32, i32) {
    %c0_i32 = arith.constant 0 : i32
    %c0_i32_0 = arith.constant 0 : i32
    return %arg0, %c0_i32 : i32, i32
  }
  func.func @transform_5(%arg0: i32, %arg1: i32) -> (i32, i32) {
    %c0_i32 = arith.constant 0 : i32
    %c0_i32_0 = arith.constant 0 : i32
    %c0_i32_1 = arith.constant 0 : i32
    return %c0_i32, %c0_i32_0 : i32, i32
  }
  func.func @transform_6(%arg0: i32, %arg1: i32) -> (i32, i32) {
    %c0_i32 = arith.constant 0 : i32
    %c0_i32_0 = arith.constant 0 : i32
    %c0_i32_1 = arith.constant 0 : i32
    return %c0_i32, %c0_i32_0 : i32, i32
  }
  func.func @transform_7(%arg0: i32, %arg1: i32) -> (i32, i32) {
    %c0_i32 = arith.constant 0 : i32
    %c0_i32_0 = arith.constant 0 : i32
    %c0_i32_1 = arith.constant 0 : i32
    return %c0_i32, %c0_i32_0 : i32, i32
  }
  func.func @transform_8(%arg0: i32, %arg1: i32) -> (i32, i32) {
    %c0_i32 = arith.constant 0 : i32
    %c0_i32_0 = arith.constant 0 : i32
    %c0_i32_1 = arith.constant 0 : i32
    return %c0_i32, %c0_i32_0 : i32, i32
  }
  func.func @transform_9(%arg0: i32, %arg1: i32) -> (i32, i32) {
    %c0_i32 = arith.constant 0 : i32
    %c0_i32_0 = arith.constant 0 : i32
    %c0_i32_1 = arith.constant 0 : i32
    return %c0_i32, %c0_i32_0 : i32, i32
  }
  func.func @transform_10(%arg0: i32, %arg1: i32) -> (i32, i32) {
    %c0_i32 = arith.constant 0 : i32
    %c0_i32_0 = arith.constant 0 : i32
    %c0_i32_1 = arith.constant 0 : i32
    return %c0_i32, %c0_i32_0 : i32, i32
  }
  func.func @transform_11(%arg0: i32, %arg1: i32) -> (i32, i32) {
    %c0_i32 = arith.constant 0 : i32
    %c0_i32_0 = arith.constant 0 : i32
    %c0_i32_1 = arith.constant 0 : i32
    return %c0_i32, %c0_i32_0 : i32, i32
  }
  func.func @transform_12(%arg0: i32, %arg1: i32) -> (i32, i32) {
    %c0_i32 = arith.constant 0 : i32
    %c0_i32_0 = arith.constant 0 : i32
    %c0_i32_1 = arith.constant 0 : i32
    return %c0_i32, %c0_i32_0 : i32, i32
  }
  func.func @transform_13(%arg0: i32, %arg1: i32) -> (i32, i32) {
    %c0_i32 = arith.constant 0 : i32
    %c0_i32_0 = arith.constant 0 : i32
    %c0_i32_1 = arith.constant 0 : i32
    return %c0_i32, %c0_i32_0 : i32, i32
  }
  func.func @transform_14(%arg0: i32, %arg1: i32) -> (i32, i32) {
    %c0_i32 = arith.constant 0 : i32
    %c0_i32_0 = arith.constant 0 : i32
    return %arg0, %c0_i32 : i32, i32
  }
}

</mosaic_0001>

<bundles_post_ra>
// kernel: tpu_custom_call.1
= control target key start
LH: loop header
LB: loop body
LE: loop exit
PB: predicated region body
PF: predicated region fallthrough
CT: control target
= control target key end

     0   :  { %s2279_s0 = inlined_call_operand.vmem [shape: f32[64,8], index: 0, kind: input, shape index: {}]   ;;  %s2280_s1 = inlined_call_operand.vmem [shape: s32[4,1,16], index: 1, kind: input, shape index: {}]   ;;  %s2281_s2 = inlined_call_operand.vmem [shape: f32[24,4], index: 2, kind: input, shape index: {}]   ;;  %s2282_s3 = inlined_call_operand.vmem [shape: f32[24,1], index: 3, kind: input, shape index: {}]   ;;  %s2283_s4 = inlined_call_operand.vmem [shape: s32[24,1], index: 4, kind: input, shape index: {}]   ;;  %s2284_s5 = inlined_call_operand.vmem [shape: f32[8,128], index: 5, kind: input, shape index: {}]   ;;  %s2285_s6 = inlined_call_operand.vmem [shape: f32[1,128], index: 6, kind: input, shape index: {}]   ;;  %s2286_s7 = inlined_call_operand.vmem [shape: f32[128,128], index: 7, kind: input, shape index: {}]   ;;  %s2287_s8 = inlined_call_operand.vmem [shape: f32[1,128], index: 8, kind: input, shape index: {}]   ;;  %s2288_s9 = inlined_call_operand.vmem [shape: f32[4,128], index: 9, kind: input, shape index: {}]   ;;  %s2289_s10 = inlined_call_operand.hbm [shape: f32[128,128], index: 10, kind: input, shape index: {}]   ;;  %s2290_s11 = inlined_call_operand.vmem [shape: f32[1,128], index: 11, kind: input, shape index: {}]   ;;  %s2291_s12 = inlined_call_operand.hbm [shape: f32[128,128], index: 12, kind: input, shape index: {}]   ;;  %s2292_s13 = inlined_call_operand.vmem [shape: f32[1,128], index: 13, kind: input, shape index: {}]   ;;  %s2293_s14 = inlined_call_operand.hbm [shape: f32[24,128], index: 14, kind: output, shape index: {}]  }
   0x1   :  { %2310 = sst [smem:[#allocation22_spill]] %s2288_s9 }
   0x2   :  { %2311 = sst [smem:[#allocation23_spill]] %s2290_s11 }
   0x3   :  { %2312 = sst [smem:[#allocation24_spill]] %s2292_s13 }
   0x4   :  { %2313 = sst [smem:[#allocation25_spill]] %s2293_s14 }
   0x5   :  { %19 = vsyncpa [#allocation4], 0 }
   0x6   :  { %20 = vsyncpa [#allocation7], 0 }
   0x7   :  { %21 = vsyncpa [#allocation5], 0 }
   0x8   :  { %23 = vsyncpa [#allocation5 + $0x1], 0  ;;  %s1944_s29 = smov 0   ;;  %s1946_s30 = smov 0  }
   0x9   :  { %s1948_s15 = smov 0   ;;  %s1950_s16 = smov 0  }
   0xa   :  { %s1952_s17 = smov 0   ;;  %s1954_s18 = smov 0  }
   0xb   :  { %s1956_s19 = smov 0   ;;  %s1958_s20 = smov 0  }
   0xc LB: > { %2314 = sst [smem:[#allocation12_spill]] %s1825_s29  ;;  %s1293_s21 = sadd.s32 4294967295, %s1853_s20   ;;  %s1853_s20 = sphi %s1958_s20, %s29_s20   ;;  %s1849_s19 = sphi %s1956_s19, %s2349_s19   ;;  %s1845_s18 = sphi %s1954_s18, %s2348_s18   ;;  %s1841_s17 = sphi %s1952_s17, %s2347_s17   ;;  %s1837_s16 = sphi %s1950_s16, %s2346_s16   ;;  %s1833_s15 = sphi %s1948_s15, %s2345_s15   ;;  %s1829_s30 = sphi %s1946_s30, %s2351_s30   ;;  %s1825_s29 = sphi %s1944_s29, %s2350_s29  }
   0xd   : > { %2315 = sst [smem:[#allocation13_spill]] %s1833_s15  ;;  %s1294_s22 = sadd.s32 4294967294, %s1853_s20  }
   0xe   : > { %2316 = sst [smem:[#allocation14_spill]] %s1845_s18  ;;  %s38_s23 = sadd.s32 1, %s1845_s18 }
   0xf   : > { %2317 = sst [smem:[#allocation15_spill]] %s1849_s19  ;;  %s41_s24 = sadd.s32 1, %s1849_s19 }
  0x10   : > { %2318 = sst [smem:[#allocation16_spill]] %s1853_s20  ;;  %p39_p0 = scmp.ge.s32.totalorder %s38_s23, 4 }
  0x11   : > { %s367_s25 = sadd.s32 1, %s1833_s15  ;;  %p377_p1 = scmp.ne.s32.totalorder %s1833_s15, %s1829_s30 }
  0x12   : > { %p378_p2 = scmp.eq.s32.totalorder %s1293_s21, 11  ;;  %s2353_s23 = smov (%p39_p0, %s38_s23), 0 }
  0x13   : > { %2319 = sst [smem:[#allocation17_spill]] %s2353_s23  ;;  %s2355_s24 = smov (!%p39_p0, %s41_s24), %s1849_s19 }
  0x14   : > { %p1994_p3 = por %p378_p2, %p377_p1  ;;  %p383_p4 = scmp.ne.s32.totalorder %s1829_s30, %s1825_s29 }
  0x15   : > { %p43_p5 = scmp.ge.s32.totalorder %s2355_s24, 3  ;;  %p384_p6 = scmp.eq.s32.totalorder %s1294_s22, 11 }
  0x16   : > { %s2320_s26 = scalar_select %p1994_p3, 1, 0 }
  0x17   : > { %p1295_p7 = scmp.ge.s32.totalorder %s1853_s20, 1  ;;  %p391_p8 = scmp.lt.s32.totalorder %s1853_s20, 13 }
  0x18   : > { %2321 = sst [smem:[#allocation18_spill]] %s2320_s26  ;;  %s2357_s24 = smov (%p43_p5, %s2355_s24), 0 }
  0x19   : > { %2322 = sst [smem:[#allocation19_spill]] %s2357_s24  ;;  %p2004_p9 = por %p384_p6, %p383_p4 }
  0x1a   : > { %p2008_p10 = pnand %p1295_p7, %p391_p8  ;;  %s364_s23 = ssub.s32 %s1849_s19, %s2357_s24 }
  0x1b   : > { %s2323_s27 = scalar_select %p2004_p9, 1, 0 }
  0x1c   : > { %s2325_s28 = scalar_select %p2008_p10, 1, 0 }
  0x1d   : > { %2324 = sst [smem:[#allocation20_spill]] %s2323_s27  ;;  %p365_p11 = scmp.eq.s32.totalorder %s364_s23, 0 }
  0x1e   : > { %p1600_p12 = pneg %p2008_p10  ;;  %p2016_p13 = scmp.eq.s32.totalorder %s1293_s21, 0 }
  0x1f   : > { %s2021_s18 = scalar_select %p365_p11, %s1833_s15, %s367_s25  }
  0x20   : > { %s2326_s22 = scalar_select %p2016_p13, 1, 0 }
  0x21   : > { %2327 = sst [smem:[#allocation21_spill]] %s2021_s18  ;;  %s1855_s29 = smov [#allocation3]  }
  0x22   : > { %s418_s20 = sshll.u32 %s1855_s29, 4  ;;  %p2025_p0 = pnand %p2016_p13, %p1600_p12  ;;  %s419_s20 = int_to_ptr.vmem [resolvable:$true] %s418_s20 }
  0x23   : > { %s1695_s21 = scalar_lea.hbm %s2289_s10, 2048 }
  0x24   : > { %p1696_p1 = scmp.ne.s32.totalorder %s2289_s10, %s1695_s21  ;;  %p1697_p2 = pneg %p2025_p0 }
  0x25   : > { %p1702_p6 = scmp.lt.u32.totalorder %s1695_s21, %s2289_s10 }
  0x26   : > { %p1698_p4 = pnand %p1697_p2, %p1696_p1 }
  0x28   : > { %p1699_p5 = pneg %p1698_p4 }
  0x2a   : > { %p1704_p7 = pnand %p1702_p6, %p1699_p5 }
  0x2c   : > { %1707 = shalt.err (!%p1704_p7)
}
  0x2d   : > { %s1708_s18 = scalar_lea.vmem %s419_s20, 2048  ;;  %p1716_p9 = scmp.lt.s32.totalorder %s419_s20, %s419_s20 }
  0x2e   : > { %p1709_p8 = scmp.ne.s32.totalorder %s419_s20, %s1708_s18  ;;  %p1717_p3 = scmp.lt.s32.totalorder %s1708_s18, %s1708_s18 }
  0x30   : > { %p1711_p11 = pnand %p1709_p8, %p1697_p2  ;;  %p1718_p13 = por %p1717_p3, %p1716_p9 }
  0x32   : > { %p1712_p12 = pneg %p1711_p11 }
  0x34   : > { %p1719_p10 = pnand %p1718_p13, %p1712_p12 }
  0x36   : > { %1722 = shalt.err (!%p1719_p10)
}
  0x37   : > { %s1856_s14 = smov 128   ;;  %s1857_s19 = smov 8  }
  0x38   : > { %1603 = dma.hbm_to_vmem [thread:$0]  (!%p2025_p0), %s2289_s10, 2048, %s419_s20, [#allocation4], %s1856_s14, %s1856_s14, %s1857_s19  }
  0x39   : > { %s1858_s21 = smov [#allocation6]   ;;  %s1723_s26 = scalar_lea.hbm %s2291_s12, 2048 }
  0x3a   : > { %s434_s29 = sshll.u32 %s1858_s21, 4  ;;  %p1724_p3 = scmp.ne.s32.totalorder %s2291_s12, %s1723_s26  ;;  %s435_s29 = int_to_ptr.vmem [resolvable:$true] %s434_s29 }
  0x3b   : > { %p1730_p13 = scmp.lt.u32.totalorder %s1723_s26, %s2291_s12 }
  0x3c   : > { %p1726_p9 = pnand %p1724_p3, %p1697_p2 }
  0x3e   : > { %p1727_p10 = pneg %p1726_p9 }
  0x40   : > { %p1732_p1 = pnand %p1730_p13, %p1727_p10 }
  0x42   : > { %1735 = shalt.err (!%p1732_p1)
}
  0x43   : > { %s1736_s20 = scalar_lea.vmem %s435_s29, 2048  ;;  %p1744_p7 = scmp.lt.s32.totalorder %s435_s29, %s435_s29 }
  0x44   : > { %p1737_p4 = scmp.ne.s32.totalorder %s435_s29, %s1736_s20  ;;  %p1745_p8 = scmp.lt.s32.totalorder %s1736_s20, %s1736_s20 }
  0x46   : > { %p1739_p5 = pnand %p1737_p4, %p1697_p2  ;;  %p1746_p11 = por %p1745_p8, %p1744_p7 }
  0x48   : > { %p1740_p6 = pneg %p1739_p5 }
  0x4a   : > { %p1747_p12 = pnand %p1746_p11, %p1740_p6 }
  0x4c   : > { %1750 = shalt.err (!%p1747_p12)
}
  0x4d   : > { %1606 = dma.hbm_to_vmem [thread:$0]  (!%p2025_p0), %s2291_s12, 2048, %s435_s29, [#allocation7], %s1856_s14, %s1856_s14, %s1857_s19  }
  0x4e   : > { %p2329_p3 = scmp.ne.s32.totalorder %s2325_s28, 0 }
  0x4f   : > { %p2330_p9 = scmp.ne.s32.totalorder (!%p2329_p3), %s2326_s22, 0 }
  0x50   : > { %489 = sbr.rel (%p2329_p3) target bundleno = 1227 (0x4cb), region = 76 }
  0x57   : > { %1812 = dma.done.wait (%p2330_p9), [#allocation4], 2048  }
  0x58   : > { %1814 = vsyncadd (%p2330_p9), [#allocation4], 4294965248 }
  0x59   : > { %1816 = dma.done.wait (%p2330_p9), [#allocation7], 2048  }
  0x5a   : > { %1818 = vsyncadd (%p2330_p9), [#allocation7], 4294965248  ;;  %s2309_s9 = sand.u32 1, %s1829_s30   ;;  %s1303_s11 = sshll.u32 %s1837_s16, 1 }
  0x5b   : > { %s2085_s26 = sshll.u32 %s2309_s9, 3  ;;  %p555_p0 = scmp.lt.s32.totalorder %s1303_s11, 7 }
  0x5c   : > { %p560_p2 = scmp.lt.s32.totalorder %s1837_s16, 3  ;;  %p563_p10 = scmp.lt.s32.totalorder %s1841_s17, 2 }
  0x5d   : > { %s2359_s11 = smov (!%p555_p0, %s1303_s11), 7  ;;  %p1308_p13 = scmp.ne.s32.totalorder %s1837_s16, 0 }
  0x5e   : > { %s2089_s27 = scalar_select %p560_p2, %s1837_s16, 3 }
  0x5f   : > { %s1304_s28 = sshll.u32 %s2359_s11, 3  ;;  %578 = sbr.rel (%p1308_p13) target bundleno = 102 (0x66), region = 88  ;;  %v1859_v0 = vmov (!%p1308_p13), 0.0  }
  0x60   : > { %s558_s19 = scalar_lea.vmem %s2279_s0, %s1304_s28  ;;  %s562_s21 = scalar_lea.vmem %s2280_s1, %s2089_s27  ;;  %579 = vst [vmem:[#allocation2] sm:$0xff] (!%p1308_p13), %v1859_v0 }
  0x61   : > { %s564_s29 = scalar_select %p563_p10, %s1841_s17, 2 }
  0x63   : > { %s2100_s25 = sshll.u32 %s564_s29, 3 }
  0x64   : > { %s566_s13 = scalar_lea.vmem %s2281_s2, %s2100_s25  ;;  %s570_s9 = scalar_lea.vmem %s2282_s3, %s2100_s25 }
  0x65   : > { %s574_s14 = scalar_lea.vmem %s2283_s4, %s2100_s25 }
  0x66 PF: > { %v582_v1 = vld [vmem:[%s2284_s5] sm:$0xff]  ;;  %vm590_vm0 = vcmask 64512   ;;  %v581_v3 = vld [vmem:[%s558_s19 + $0x8] sm:$0xff]  ;;  %v676_v6 = vld [vmem:[%s2286_s7 + $0x10] sm:$0xff]  ;;  %v1860_v29 = vmov 0   ;;  %v1861_v37 = vmov 0.0|0.0  }
  0x67   : > { %v580_v2 = vld [vmem:[%s558_s19] sm:$0xff]  ;;  %1385 = vmatprep.subr.mxu0 %v582_v1  ;;  %v675_v5 = vld [vmem:[%s2286_s7 + $0x8] sm:$0xff]  ;;  %v677_v8 = vld [vmem:[%s2286_s7 + $0x18] sm:$0xff]  ;;  %1693 = vset.pattern.permute.xlu0 %v1860_v29  ;;  %vm1862_vm1 = vmmov 0   ;;  %v1863_v38 = vmov 0.0   ;;  %vm785_vm3 = vcmask 130048  }
  0x68   : > { %1387 = vmatprep.mubr.msk.f32.mxu0 %vm590_vm0, %v580_v2  ;;  %v674_v4 = vld [vmem:[%s2286_s7] sm:$0xff]  ;;  %1386 = vmatpush3.msra.mxu0 %v582_v1  ;;  %v1511_v9 = vpack.c.bf16 %v677_v8, %v676_v6  ;;  %v679_v11 = vld [vmem:[%s2286_s7 + $0x28] sm:$0xff]  ;;  %v680_v13 = vld [vmem:[%s2286_s7 + $0x30] sm:$0xff]  ;;  %p1316_p1 = scmp.ne.s32.totalorder %s1837_s16, 3 }
  0x69   : > { %v1507_v7 = vpack.c.bf16 %v675_v5, %v674_v4  ;;  %1388 = vmatmul.mubr.msk.f32.vlgmr.msra.gmra.mrb[0].mxu0 %vm590_vm0, %v581_v3  ;;  %v678_v10 = vld [vmem:[%s2286_s7 + $0x20] sm:$0xff]  ;;  %v681_v14 = vld [vmem:[%s2286_s7 + $0x38] sm:$0xff]  ;;  %v683_v17 = vld [vmem:[%s2286_s7 + $0x48] sm:$0xff]  ;;  %1539 = vmatprep.subr.bf16.mxu0 %v1861_v37  ;;  %v1864_v55 = vmov (!%p1316_p1), 0   ;;  %v1865_v56 = vmov (!%p1316_p1), 0.0|0.0   ;;  %v1866_v60 = vmov (!%p1316_p1), 0.0  }
  0x6a   : > { %v1515_v12 = vpack.c.bf16 %v679_v11, %v678_v10  ;;  %v1519_v15 = vpack.c.bf16 %v681_v14, %v680_v13  ;;  %v682_v16 = vld [vmem:[%s2286_s7 + $0x40] sm:$0xff]  ;;  %v684_v19 = vld [vmem:[%s2286_s7 + $0x50] sm:$0xff]  ;;  %v685_v20 = vld [vmem:[%s2286_s7 + $0x58] sm:$0xff]  ;;  %1429 = vmatprep.mubr.msk.f32.mxu0 %vm1862_vm1, %v1863_v38  ;;  %vm1867_vm4 = vmmov (!%p1316_p1), 0   ;;  %vm965_vm5 = vcmask (!%p1316_p1), 1043456   ;;  %s2331_s19 = sld [smem:[#allocation22_spill]] (!%p1316_p1) }
  0x6b   : > { %1508 = vmatprep.subr.bf16.mxu1 %v1507_v7  ;;  %v1523_v18 = vpack.c.bf16 %v683_v17, %v682_v16  ;;  %v1527_v21 = vpack.c.bf16 %v685_v20, %v684_v19  ;;  %v686_v22 = vld [vmem:[%s2286_s7 + $0x60] sm:$0xff]  ;;  %v687_v23 = vld [vmem:[%s2286_s7 + $0x68] sm:$0xff]  ;;  %v688_v25 = vld [vmem:[%s2286_s7 + $0x70] sm:$0xff]  ;;  %vm961_vm6 = vcmask (!%p1316_p1), 31744   ;;  %s2332_s15 = sld [smem:[#allocation23_spill]] (!%p1316_p1)  ;;  %s2333_s28 = sld [smem:[#allocation24_spill]] (!%p1316_p1) }
  0x6c   : > { %1510 = vmatpush3.bf16.msra.mxu1 %v1507_v7  ;;  %v1531_v24 = vpack.c.bf16 %v687_v23, %v686_v22  ;;  %v689_v26 = vld [vmem:[%s2286_s7 + $0x78] sm:$0xff]  ;;  %v772_v28 = vld [vmem:[%s574_s14] sm:$0xff]  ;;  %v875_v53 = vld [vmem:[#allocation3] sm:$0xff] (!%p1316_p1)  ;;  %s2334_s14 = scalar_lea.vmem (!%p1316_p1), [#allocation8], %s2085_s26 }
  0x6d   : > { %1512 = vmatprep.subr.bf16.mxu1 %v1511_v9  ;;  %v1535_v27 = vpack.c.bf16 %v689_v26, %v688_v25  ;;  %775 = vperm.xlu0 %1693, %v772_v28   ;;  %v1309_v30 = vld [vmem:[%s2285_s6] ss:$0 sm:$0xff]  ;;  %v876_v54 = vld [vmem:[#allocation3 + $0x8] sm:$0xff] (!%p1316_p1)  ;;  %v877_v58 = vld [vmem:[#allocation3 + $0x10] sm:$0xff] (!%p1316_p1) }
  0x6e   : > { %v1312_v39 = vld [vmem:[%s2287_s8] ss:$0 sm:$0xff]  ;;  %v1543_v57 = vpack.c.bf16 (!%p1316_p1), %v876_v54, %v875_v53  ;;  %v879_v62 = vld [vmem:[#allocation3 + $0x20] sm:$0xff] (!%p1316_p1)  ;;  %v880_v63 = vld [vmem:[#allocation3 + $0x28] sm:$0xff] (!%p1316_p1) }
  0x6f   : > { %v1313_v41 = vld [vmem:[%s562_s21] ss:$0 sm:$0xff]  ;;  %v1048_v2 = vld [vmem:[#allocation6] sm:$0xff] (!%p1316_p1)  ;;  %v1549_v3 = vpack.c.bf16 (!%p1316_p1), %v880_v63, %v879_v62  ;;  %v1049_v4 = vld [vmem:[#allocation6 + $0x8] sm:$0xff] (!%p1316_p1) }
  0x70   : > { %1514 = vmatpush3.bf16.msra.mxu1 %v1511_v9  ;;  %v784_v48 = vld [vmem:[#allocation2] sm:$0xff]  ;;  %v1050_v5 = vld [vmem:[#allocation6 + $0x10] sm:$0xff] (!%p1316_p1)  ;;  %v1567_v9 = vpack.c.bf16 (!%p1316_p1), %v1049_v4, %v1048_v2  ;;  %v1053_v13 = vld [vmem:[#allocation6 + $0x28] sm:$0xff] (!%p1316_p1) }
  0x71   : > { %1516 = vmatprep.subr.bf16.mxu1 %v1515_v12  ;;  %v866_v52 = vld [vmem:[%s570_s9] sm:$0xff] (!%p1316_p1)  ;;  %1694 = vset.pattern.permute.xlu0 (!%p1316_p1), %v1864_v55  ;;  %v881_v7 = vld [vmem:[#allocation3 + $0x30] sm:$0xff] (!%p1316_p1)  ;;  %v883_v14 = vld [vmem:[#allocation3 + $0x40] sm:$0xff] (!%p1316_p1) }
  0x72   : > { %v878_v59 = vld [vmem:[#allocation3 + $0x18] sm:$0xff] (!%p1316_p1)  ;;  %869 = vperm.xlu0 (!%p1316_p1), %1694, %v866_v52   ;;  %v885_v20 = vld [vmem:[#allocation3 + $0x50] sm:$0xff] (!%p1316_p1)  ;;  %v1057_v25 = vld [vmem:[#allocation6 + $0x48] sm:$0xff] (!%p1316_p1) }
  0x73   : > { %v1546_v61 = vpack.c.bf16 (!%p1316_p1), %v878_v59, %v877_v58  ;;  %v874_v0 = vld [vmem:[%s2331_s19] sm:$0xf] (!%p1316_p1)  ;;  %v887_v26 = vld [vmem:[#allocation3 + $0x60] sm:$0xff] (!%p1316_p1) }
  0x74   : > { %1518 = vmatpush3.bf16.msra.mxu1 %v1515_v12  ;;  %v873_v1 = vld [vmem:[%s566_s13] sm:$0xff] (!%p1316_p1)  ;;  %v1052_v12 = vld [vmem:[#allocation6 + $0x20] sm:$0xff] (!%p1316_p1) }
  0x75   : > { %1520 = vmatprep.subr.bf16.mxu1 %v1519_v15  ;;  %v1051_v6 = vld [vmem:[#allocation6 + $0x18] sm:$0xff] (!%p1316_p1)  ;;  %v1573_v16 = vpack.c.bf16 (!%p1316_p1), %v1053_v13, %v1052_v12 }
  0x76   : > { %v882_v8 = vld [vmem:[#allocation3 + $0x38] sm:$0xff] (!%p1316_p1)  ;;  %v1570_v10 = vpack.c.bf16 (!%p1316_p1), %v1051_v6, %v1050_v5 }
  0x77   : > { %v1552_v11 = vpack.c.bf16 (!%p1316_p1), %v882_v8, %v881_v7  ;;  %v1055_v19 = vld [vmem:[#allocation6 + $0x38] sm:$0xff] (!%p1316_p1) }
  0x78   : > { %1522 = vmatpush3.bf16.msra.mxu1 %v1519_v15  ;;  %v884_v15 = vld [vmem:[#allocation3 + $0x48] sm:$0xff] (!%p1316_p1)  ;;  %v1320_v53 = vld [vmem:[%s2333_s28] ss:$0 sm:$0xff] (!%p1316_p1) }
  0x79   : > { %1524 = vmatprep.subr.bf16.mxu1 %v1523_v18  ;;  %v1555_v17 = vpack.c.bf16 (!%p1316_p1), %v884_v15, %v883_v14 }
  0x7c   : > { %1526 = vmatpush3.bf16.msra.mxu1 %v1523_v18  ;;  %v1054_v18 = vld [vmem:[#allocation6 + $0x30] sm:$0xff] (!%p1316_p1) }
  0x7d   : > { %1528 = vmatprep.subr.bf16.mxu1 %v1527_v21  ;;  %v1576_v22 = vpack.c.bf16 (!%p1316_p1), %v1055_v19, %v1054_v18 }
  0x80   : > { %1530 = vmatpush3.bf16.msra.mxu1 %v1527_v21  ;;  %v886_v21 = vld [vmem:[#allocation3 + $0x58] sm:$0xff] (!%p1316_p1) }
  0x81   : > { %1532 = vmatprep.subr.bf16.mxu1 %v1531_v24  ;;  %v1558_v23 = vpack.c.bf16 (!%p1316_p1), %v886_v21, %v885_v20 }
  0x84   : > { %1534 = vmatpush3.bf16.msra.mxu1 %v1531_v24  ;;  %v1056_v24 = vld [vmem:[#allocation6 + $0x40] sm:$0xff] (!%p1316_p1) }
  0x85   : > { %1536 = vmatprep.subr.bf16.mxu1 %v1535_v27  ;;  %v1579_v28 = vpack.c.bf16 (!%p1316_p1), %v1057_v25, %v1056_v24 }
  0x88   : > { %1538 = vmatpush3.bf16.msra.mxu1 %v1535_v27  ;;  %v888_v27 = vld [vmem:[#allocation3 + $0x68] sm:$0xff] (!%p1316_p1) }
  0x89   : > { %1467 = vmatprep.subr.mxu1 (!%p1316_p1), %v1866_v60  ;;  %v1561_v29 = vpack.c.bf16 (!%p1316_p1), %v888_v27, %v887_v26 }
  0xec   : > { %v776_v42 = vpop.permute.xlu0 %775 }
  0xed   : > { %vm781_vm2 = vcmp.eq.s32.totalorder %v776_v42, %v1313_v41  ;;  %v1062_v42 = vld [vmem:[#allocation6 + $0x70] sm:$0xff] (!%p1316_p1) }
  0xee   : > { %v1314_v47 = vsel %vm781_vm2, 1.0, %v1863_v38 }
  0xf1   : > { %v870_v37 = vpop.permute.xlu0 (!%p1316_p1), %869 }
 0x13c   : > { %v1389_v31 = vpop.f32.mrb[0].mxu0 }
 0x13d   : > { %v669_v32 = vadd.f32 %v1389_v31, %v1309_v30  ;;  %v663_v33 = vpop.f32.mrb[1].mxu0  ;;  %v1059_v31 = vld [vmem:[#allocation6 + $0x58] sm:$0xff] (!%p1316_p1) }
 0x13e   : > { %v664_v34 = vadd.f32 %v1309_v30, %v663_v33  ;;  %v1058_v30 = vld [vmem:[#allocation6 + $0x50] sm:$0xff] (!%p1316_p1)  ;;  %v890_v33 = vld [vmem:[#allocation3 + $0x78] sm:$0xff] (!%p1316_p1) }
 0x13f   : > { %v673_v36 = vmax.f32 %v669_v32, 0.0  ;;  %v889_v32 = vld [vmem:[#allocation3 + $0x70] sm:$0xff] (!%p1316_p1) }
 0x140   : > { %v672_v35 = vmax.f32 %v664_v34, 0.0  ;;  %v1582_v34 = vpack.c.bf16 (!%p1316_p1), %v1059_v31, %v1058_v30 }
 0x142   : > { %1422 = vmatprep.mubr.f32.mxu1 %v672_v35  ;;  %v1564_v35 = vpack.c.bf16 (!%p1316_p1), %v890_v33, %v889_v32 }
 0x143   : > { %1423 = vmatmul.mubr.f32.vlgmr.msra.gmra.mrb[0].mxu1 %v673_v36 }
 0x144   : > { %1469 = vmatprep.mubr.msk.f32.mxu1 (!%p1316_p1), %vm1867_vm4, %v1866_v60  ;;  %1468 = vmatpush3.msk.msra.mxu1 (!%p1316_p1), %vm965_vm5, %v874_v0 }
 0x145   : > { %1566 = vmatprep.subr.bf16.mxu1 (!%p1316_p1), %v1865_v56 }
 0x216   : > { %v1424_v40 = vpop.f32.mrb[0].mxu1 }
 0x217   : > { %v769_v43 = vadd.f32 %v1424_v40, %v1312_v39  ;;  %v763_v44 = vpop.f32.mrb[1].mxu1  ;;  %1470 = vmatmul.mubr.msk.f32.vlgmr.msra.gmra.mrb[0].mxu1 (!%p1316_p1), %vm961_vm6, %v873_v1  ;;  %v1061_v40 = vld [vmem:[#allocation6 + $0x68] sm:$0xff] (!%p1316_p1) }
 0x218   : > { %v764_v45 = vadd.f32 %v1312_v39, %v763_v44  ;;  %1504 = vmatprep.mubr.msk.f32.mxu1 (!%p1316_p1), %vm1867_vm4, %v1866_v60  ;;  %1568 = vmatpush3.bf16.msra.mxu1 (!%p1316_p1), %v1567_v9  ;;  %v1060_v39 = vld [vmem:[#allocation6 + $0x60] sm:$0xff] (!%p1316_p1) }
 0x219   : > { %1569 = vmatprep.subr.bf16.mxu1 (!%p1316_p1), %v1865_v56  ;;  %v1585_v41 = vpack.c.bf16 (!%p1316_p1), %v1061_v40, %v1060_v39 }
 0x21a   : > { %v1540_v46 = vpack.c.bf16 %v769_v43, %v764_v45  ;;  %v1063_v43 = vld [vmem:[#allocation6 + $0x78] sm:$0xff] (!%p1316_p1) }
 0x21b   : > { %v1588_v44 = vpack.c.bf16 (!%p1316_p1), %v1063_v43, %v1062_v42 }
 0x21c   : > { %1541 = vmatpush3.bf16.msra.mxu0 %v1540_v46  ;;  %1571 = vmatpush3.bf16.msra.mxu1 (!%p1316_p1), %v1570_v10 }
 0x21d   : > { %1542 = vmatprep.subr.bf16.mxu0 (!%p1316_p1), %v1865_v56  ;;  %1572 = vmatprep.subr.bf16.mxu1 (!%p1316_p1), %v1865_v56 }
 0x21f   : > { %1430 = vmatmul.mubr.msk.f32.vlgmr.msra.gmra.mrb[2].mxu0 %vm785_vm3, %v1314_v47 }
 0x220   : > { %1544 = vmatpush3.bf16.msra.mxu0 (!%p1316_p1), %v1543_v57  ;;  %1464 = vmatprep.mubr.msk.f32.mxu0 (!%p1316_p1), %vm1867_vm4, %v1866_v60 }
 0x221   : > { %1545 = vmatprep.subr.bf16.mxu0 (!%p1316_p1), %v1865_v56  ;;  %1574 = vmatpush3.bf16.msra.mxu1 (!%p1316_p1), %v1573_v16 }
 0x222   : > { %1575 = vmatprep.subr.bf16.mxu1 (!%p1316_p1), %v1865_v56 }
 0x224   : > { %1547 = vmatpush3.bf16.msra.mxu0 (!%p1316_p1), %v1546_v61 }
 0x225   : > { %1548 = vmatprep.subr.bf16.mxu0 (!%p1316_p1), %v1865_v56  ;;  %1577 = vmatpush3.bf16.msra.mxu1 (!%p1316_p1), %v1576_v22 }
 0x226   : > { %1578 = vmatprep.subr.bf16.mxu1 (!%p1316_p1), %v1865_v56 }
 0x228   : > { %1550 = vmatpush3.bf16.msra.mxu0 (!%p1316_p1), %v1549_v3 }
 0x229   : > { %1551 = vmatprep.subr.bf16.mxu0 (!%p1316_p1), %v1865_v56  ;;  %1580 = vmatpush3.bf16.msra.mxu1 (!%p1316_p1), %v1579_v28 }
 0x22a   : > { %1581 = vmatprep.subr.bf16.mxu1 (!%p1316_p1), %v1865_v56 }
 0x22c   : > { %1553 = vmatpush3.bf16.msra.mxu0 (!%p1316_p1), %v1552_v11 }
 0x22d   : > { %1554 = vmatprep.subr.bf16.mxu0 (!%p1316_p1), %v1865_v56  ;;  %1583 = vmatpush3.bf16.msra.mxu1 (!%p1316_p1), %v1582_v34 }
 0x22e   : > { %1584 = vmatprep.subr.bf16.mxu1 (!%p1316_p1), %v1865_v56 }
 0x230   : > { %1556 = vmatpush3.bf16.msra.mxu0 (!%p1316_p1), %v1555_v17 }
 0x231   : > { %1557 = vmatprep.subr.bf16.mxu0 (!%p1316_p1), %v1865_v56  ;;  %1586 = vmatpush3.bf16.msra.mxu1 (!%p1316_p1), %v1585_v41 }
 0x232   : > { %1587 = vmatprep.subr.bf16.mxu1 (!%p1316_p1), %v1865_v56 }
 0x234   : > { %1559 = vmatpush3.bf16.msra.mxu0 (!%p1316_p1), %v1558_v23 }
 0x235   : > { %1560 = vmatprep.subr.bf16.mxu0 (!%p1316_p1), %v1865_v56  ;;  %1589 = vmatpush3.bf16.msra.mxu1 (!%p1316_p1), %v1588_v44 }
 0x238   : > { %1562 = vmatpush3.bf16.msra.mxu0 (!%p1316_p1), %v1561_v29 }
 0x239   : > { %1563 = vmatprep.subr.bf16.mxu0 (!%p1316_p1), %v1865_v56 }
 0x23c   : > { %1565 = vmatpush3.bf16.msra.mxu0 (!%p1316_p1), %v1564_v35 }
 0x2ea   : > { %v1035_v45 = vpop.f32.mrb[0].mxu1 (!%p1316_p1) }
 0x2eb   : > { %v1471_v46 = vpop.f32.mrb[1].mxu1 (!%p1316_p1) }
 0x2ef   : > { %864 = sbr.rel (%p1316_p1) target bundleno = 1200 (0x4b0), region = 92 }
 0x2f2   : > { %v855_v49 = vpop.f32.mrb[2].mxu0 }
 0x2f3   : > { %v859_v50 = vadd.f32 %v855_v49, %v784_v48  ;;  %v1431_v51 = vpop.f32.mrb[3].mxu0  ;;  %v1319_v48 = vld [vmem:[%s2332_s15] ss:$0 sm:$0xff] (!%p1316_p1) }
 0x2f5   : > { %860 = vst [vmem:[#allocation2] sm:$0xff] %v859_v50 }
 0x2fc   : > { %v865_v36 = vld [vmem:[#allocation2] sm:$0xff] }
 0x2fd   : > { %v872_v38 = vmul.f32 %v870_v37, %v865_v36 }
 0x2ff   : > { %1465 = vmatmul.mubr.f32.vlgmr.msra.gmra.mrb[0].mxu0 %v872_v38 }
 0x3d2   : > { %v957_v47 = vpop.f32.mrb[0].mxu0 }
 0x3d3   : > { %v1036_v49 = vadd.f32 %v1035_v45, %v957_v47  ;;  %v1466_v50 = vpop.f32.mrb[1].mxu0 }
 0x3d5   : > { %v1046_v51 = vadd.f32 %v1319_v48, %v1036_v49 }
 0x3d7   : > { %v1047_v52 = vmax.f32 %v1046_v51, 0.0 }
 0x3d9   : > { %1505 = vmatmul.mubr.f32.vlgmr.msra.gmra.mrb[2].mxu1 %v1047_v52 }
 0x4ac   : > { %v1137_v54 = vpop.f32.mrb[2].mxu1 }
 0x4ad   : > { %v1138_v55 = vadd.f32 %v1320_v53, %v1137_v54  ;;  %v1506_v56 = vpop.f32.mrb[3].mxu1 }
 0x4af   : > { %1141 = vst [vmem:[%s2334_s14] sm:$0xff] %v1138_v55 }
 0x4b0 PF: > { %s2335_s24 = sld [smem:[#allocation18_spill]]  ;;  %s1322_s23 = sshll.u32 %s1841_s17, 7 }
 0x4b1   : > { %s2336_s21 = sld [smem:[#allocation25_spill]]  ;;  %s2337_s9 = scalar_lea.vmem [#allocation8], %s2085_s26 }
 0x4b2   : > { %s1156_s19 = sshll.u32 %s2337_s9, 4  ;;  %s2338_s18 = sand.u32 1, %s1829_s30   ;;  %s1157_s19 = int_to_ptr.vmem [resolvable:$true] %s1156_s19 }
 0x4b3   : > { %s1143_s20 = scalar_lea.sflag [#allocation5], %s2338_s18  ;;  %s1751_s25 = scalar_lea.vmem %s1157_s19, 128 }
 0x4b4   : > { %p1752_p4 = scmp.ne.s32.totalorder %s1157_s19, %s1751_s25  ;;  %s1868_s13 = smov [#allocation8]  }
 0x4b5   : > { %s1755_s15 = sshll.u32 %s1868_s13, 4  ;;  %s1756_s15 = int_to_ptr.vmem [resolvable:$false] %s1755_s15 }
 0x4b6   : > { %p2339_p5 = scmp.ne.s32.totalorder %s2335_s24, 0  ;;  %s1757_s11 = scalar_lea.vmem %s1756_s15, 256 }
 0x4b7   : > { %s2228_s16 = scalar_lea.hbm %s2336_s21, %s1322_s23  ;;  %p1758_p8 = scmp.lt.s32.totalorder %s1157_s19, %s1756_s15 }
 0x4b8   : > { %p1753_p6 = pnand %p1752_p4, %p2339_p5  ;;  %p1759_p11 = scmp.lt.s32.totalorder %s1757_s11, %s1751_s25 }
 0x4ba   : > { %p1754_p7 = pneg %p1753_p6  ;;  %p1760_p12 = por %p1759_p11, %p1758_p8 }
 0x4bc   : > { %p1761_p3 = pnand %p1760_p12, %p1754_p7 }
 0x4be   : > { %1764 = shalt.err (!%p1761_p3)
}
 0x4bf   : > { %s1765_s17 = scalar_lea.hbm %s2228_s16, 128  ;;  %s1769_s28 = scalar_lea.hbm %s2336_s21, 384 }
 0x4c0   : > { %p1766_p9 = scmp.ne.s32.totalorder %s2228_s16, %s1765_s17  ;;  %p1770_p10 = scmp.lt.u32.totalorder %s2228_s16, %s2336_s21 }
 0x4c1   : > { %p1771_p13 = scmp.lt.u32.totalorder %s1769_s28, %s1765_s17  ;;  %p1773_p4 = scmp.lt.u32.totalorder %s1765_s17, %s2228_s16 }
 0x4c2   : > { %p1767_p0 = pnand %p1766_p9, %p2339_p5 }
 0x4c3   : > { %p1772_p1 = por %p1771_p13, %p1770_p10 }
 0x4c4   : > { %p1768_p2 = pneg %p1767_p0 }
 0x4c5   : > { %p1774_p6 = por %p1773_p4, %p1772_p1 }
 0x4c7   : > { %p1775_p7 = pnand %p1774_p6, %p1768_p2 }
 0x4c9   : > { %1778 = shalt.err (!%p1775_p7)
}
 0x4ca   : > { %1598 = dma.vmem_to_hbm [thread:$0]  (%p2339_p5), %s1157_s19, 128, %s2228_s16, %s1143_s20  }
 0x4cb PF: > { %s2340_s29 = sld [smem:[#allocation16_spill]]  ;;  %s2341_s27 = sld [smem:[#allocation12_spill]] }
 0x4cc   : > { %s2342_s9 = sld [smem:[#allocation20_spill]] }
 0x4d1   : > { %p1615_p8 = scmp.ge.s32.totalorder %s2340_s29, 2  ;;  %s1168_s18 = sand.u32 1, %s2341_s27  }
 0x4d2   : > { %p2343_p11 = scmp.ne.s32.totalorder %s2342_s9, 0  ;;  %s1169_s25 = scalar_lea.sflag [#allocation5], %s1168_s18 }
 0x4d4   : > { %p1608_p12 = pnand %p1615_p8, %p2343_p11 }
 0x4d6   : > { %1820 = dma.done.wait (!%p1608_p12), %s1169_s25, 128  }
 0x4d7   : > { %1822 = vsyncadd (!%p1608_p12), %s1169_s25, 4294967168  ;;  %s29_s20 = sadd.s32 1, %s2340_s29   ;;  %s2344_s13 = sld [smem:[#allocation13_spill]] }
 0x4d8   : > { %p26_p3 = scmp.ge.s32.totalorder %s29_s20, 14   ;;  %s2345_s15 = sld [smem:[#allocation21_spill]] }
 0x4d9   : > { %s2346_s16 = sld [smem:[#allocation14_spill]]  ;;  %s2347_s17 = sld [smem:[#allocation15_spill]] }
 0x4da   : > { %s2348_s18 = sld [smem:[#allocation17_spill]]  ;;  %s2349_s19 = sld [smem:[#allocation19_spill]] }
 0x4db   : > { %s2350_s29 = smov %s1829_s30  ;;  %28 = sbr.rel (!%p26_p3) target bundleno = 12 (0xc), region = 140 }
 0x4dd   : > { %s2351_s30 = smov %s2344_s13 }
 0x4e2   :  { %1174 = vsyncpa [#allocation4], 1 }
 0x4e3   :  { %1176 = vsyncpa [#allocation4 + $0x1], 1 }
 0x4e4   :  { %1177 = vsyncpa [#allocation7], 1 }
 0x4e5   :  { %1178 = vsyncpa [#allocation5], 1 }
 0x4e6   :  { %1180 = vsyncpa [#allocation5 + $0x1], 1 }

</bundles_post_ra>
